<compile_context>
chip_gen: v7x
topology: tpu7x:2x2x1
jax: 0.10.0
libtpu: 0.0.40
codegen_flags: <defaults>
</compile_context>

<pallas_src>
import functools

import jax
import jax.numpy as jnp
from jax.experimental import pallas as pl
from jax.experimental.pallas import tpu as pltpu


def _residual_block_kernel(slab_ref, w1_ref, w2_ref, o_ref, *, W, Lfull, Cmid):
    """One image per grid step.

    slab_ref: (Cin, Lext)  f32  zero-padded image, flattened (H+2)*(W+2),
                                 plus a (W+3)-wide zero halo on each side so
                                 every tap window below is in-bounds.
    w1_ref:   (9, Cmid, Cin) bf16  3x3 conv weight, tap-major (dh*3+dw).
    w2_ref:   (Cout, Cmid)   bf16  1x1 conv weight.
    o_ref:    (Cout, Lfull)  f32   output on the padded (H+2)x(W+2) grid
                                   (pad rows/cols hold garbage, cropped later).
    """
    Wp = W + 2

    # 3x3 conv on ReLU(x): nine tap windows of the same slab, one small matmul
    # each, accumulated in f32.  ReLU(pad(x)) == pad(ReLU(x)), so applying the
    # ReLU to the padded slab is exact.  Taps are read straight from the VMEM
    # ref (no big live slab value), cast to bf16 only for the MXU.
    acc = jnp.zeros((Cmid, Lfull), dtype=jnp.float32)
    for t in range(9):
        dh, dw = divmod(t, 3)
        start = dh * Wp + dw                              # static, in-bounds
        tap = slab_ref[:, start:start + Lfull]            # (Cin, Lfull) f32
        tap = jnp.maximum(tap, 0.0).astype(jnp.bfloat16)
        acc = acc + jnp.dot(w1_ref[t], tap,
                            preferred_element_type=jnp.float32)

    # Second ReLU + 1x1 conv (channel matmul), f32 accumulation.
    h2 = jnp.maximum(acc, 0.0).astype(jnp.bfloat16)
    conv2 = jnp.dot(w2_ref[...], h2,
                    preferred_element_type=jnp.float32)   # (Cout, Lfull)

    # Residual: the (dh=1, dw=1) window of the un-ReLU'd f32 slab is exactly x
    # at every valid output position -> skip connection stays exact f32.
    center = Wp + 1
    o_ref[...] = (slab_ref[:, center:center + Lfull] + conv2).astype(o_ref.dtype)


@jax.jit
def residual_block_forward(x_nchw, w1_oihw, w2_oihw):
    """PyTorch-semantics forward: x + Conv1x1(ReLU(Conv3x3_pad1(ReLU(x)))).

    x_nchw:  (B, Cin, H, W)     float32
    w1_oihw: (Cmid, Cin, 3, 3)  3x3 conv weight (PyTorch OIHW), no bias
    w2_oihw: (Cout, Cmid, 1, 1) 1x1 conv weight (PyTorch OIHW), Cout == Cin
    returns: (B, Cin, H, W)
    """
    B, Cin, H, W = x_nchw.shape
    Cmid = w1_oihw.shape[0]
    Cout = w2_oihw.shape[0]
    assert Cout == Cin, "residual add requires hidden_channels == in_channels"

    Hp, Wp = H + 2, W + 2
    Lfull = Hp * Wp              # padded-grid length (lane axis in the kernel)
    halo = W + 3                 # max |tap offset|, keeps all windows in-bounds
    Lext = Lfull + 2 * halo

    # --- glue (single ~1.3x copy of x, no 9x slab, no B<->C transpose) ------
    xp = jnp.pad(x_nchw, ((0, 0), (0, 0), (1, 1), (1, 1)))      # (B,Cin,H+2,W+2)
    slab = xp.reshape(B, Cin, Lfull)                             # row-major flatten
    slab = jnp.pad(slab, ((0, 0), (0, 0), (halo, halo)))         # (B,Cin,Lext) f32

    # Weights: tap-major (dh*3+dw) so w1_ref[t] is the (Cmid, Cin) matrix for
    # tap t; pre-cast MXU operands to bf16 (accumulation stays f32 in-kernel).
    w1_t = jnp.transpose(w1_oihw, (2, 3, 0, 1)).reshape(9, Cmid, Cin)
    w1_t = w1_t.astype(jnp.bfloat16)                             # (9, Cmid, Cin)
    w2_t = w2_oihw[:, :, 0, 0].astype(jnp.bfloat16)              # (Cout, Cmid)

    kernel = functools.partial(_residual_block_kernel, W=W, Lfull=Lfull, Cmid=Cmid)

    flops = 2 * B * Lfull * (9 * Cin * Cmid + Cmid * Cout)
    bytes_accessed = (B * Cin * Lext * 4          # slab read
                      + 9 * Cmid * Cin * 2 + Cout * Cmid * 2
                      + B * Cout * Lfull * 4)     # output write

    out_pad = pl.pallas_call(
        kernel,
        out_shape=jax.ShapeDtypeStruct((B, Cout, Lfull), jnp.float32),
        grid_spec=pltpu.PrefetchScalarGridSpec(
            num_scalar_prefetch=0,
            grid=(B,),
            in_specs=[
                pl.BlockSpec((None, Cin, Lext), lambda b: (b, 0, 0)),  # slab
                pl.BlockSpec((9, Cmid, Cin), lambda b: (0, 0, 0)),     # w1
                pl.BlockSpec((Cout, Cmid), lambda b: (0, 0)),          # w2
            ],
            out_specs=pl.BlockSpec((None, Cout, Lfull), lambda b: (b, 0, 0)),
        ),
        compiler_params=pltpu.CompilerParams(
            dimension_semantics=("parallel",),
        ),
        cost_estimate=pl.CostEstimate(
            flops=flops, transcendentals=0, bytes_accessed=bytes_accessed),
    )(slab, w1_t, w2_t)

    # Crop the pad rows/cols of the padded-grid output -> NCHW, no transpose.
    out = out_pad.reshape(B, Cout, Hp, Wp)[:, :, 1:H + 1, 1:W + 1]
    return out


def _reference_forward(x_nchw, w1_oihw, w2_oihw):
    """Pure-JAX f32 reference mirroring the PyTorch module exactly (NCHW/OIHW)."""
    dn = ("NCHW", "OIHW", "NCHW")
    h = jnp.maximum(x_nchw, 0.0)
    h = jax.lax.conv_general_dilated(
        h, w1_oihw, window_strides=(1, 1), padding=((1, 1), (1, 1)),
        dimension_numbers=dn)
    h = jnp.maximum(h, 0.0)
    h = jax.lax.conv_general_dilated(
        h, w2_oihw, window_strides=(1, 1), padding=((0, 0), (0, 0)),
        dimension_numbers=dn)
    return x_nchw + h


if __name__ == "__main__":
    # Small shapes consistent with the module (in_channels == hidden_channels
    # is required for the residual add; residual_hidden_channels is the 3x3
    # bottleneck width).
    B, Cin, H, W = 2, 32, 16, 16
    Cmid = 16            # residual_hidden_channels
    Cout = Cin           # hidden_channels

    key = jax.random.PRNGKey(0)
    kx, k1, k2 = jax.random.split(key, 3)

    x = jax.random.normal(kx, (B, Cin, H, W), dtype=jnp.float32)
    w1 = jax.random.normal(k1, (Cmid, Cin, 3, 3), dtype=jnp.float32) * 0.05
    w2 = jax.random.normal(k2, (Cout, Cmid, 1, 1), dtype=jnp.float32) * 0.05

    out = jax.block_until_ready(residual_block_forward(x, w1, w2))
    ref = jax.block_until_ready(_reference_forward(x, w1, w2))

    assert out.shape == (B, Cout, H, W)
    max_err = jnp.max(jnp.abs(out - ref))
    # bf16 MXU operands with f32 accumulation (skip path is exact f32).
    assert jnp.allclose(out, ref, atol=2e-2, rtol=2e-2), f"max abs err {max_err}"

    print("KERNEL_OK")
</pallas_src>

<mosaic_0001>
module attributes {stable_mosaic.version = 11 : i64} {
  func.func @_residual_block_kernel(%arg0: i32, %arg1: memref<1x32x362xf32, #tpu.memory_space<vmem>>, %arg2: memref<9x16x32xbf16, #tpu.memory_space<vmem>>, %arg3: memref<32x16xbf16, #tpu.memory_space<vmem>>, %arg4: memref<1x32x324xf32, #tpu.memory_space<vmem>>) attributes {dimension_semantics = [#tpu.dimension_semantics<parallel>], iteration_bounds = array<i64: 2>, scalar_prefetch = 0 : i64, scratch_operands = 0 : i64, tpu.core_type = #tpu.core_type<tc>, window_params = [{transform_indices = @transform_0, window_bounds = array<i64: 1, 32, 362>}, {pipeline_mode = #tpu.pipeline_mode<synchronous>, transform_indices = @transform_1, window_bounds = array<i64: 9, 16, 32>}, {pipeline_mode = #tpu.pipeline_mode<synchronous>, transform_indices = @transform_2, window_bounds = array<i64: 32, 16>}, {transform_indices = @transform_3, window_bounds = array<i64: 1, 32, 324>}]} {
    %cst = arith.constant 0.000000e+00 : f32
    %0 = vector.broadcast %cst : f32 to vector<16x324xf32>
    %c0 = arith.constant 0 : index
    %c0_0 = arith.constant 0 : index
    %c0_1 = arith.constant 0 : index
    %1 = vector.load %arg1[%c0, %c0_0, %c0_1] : memref<1x32x362xf32, #tpu.memory_space<vmem>>, vector<1x32x324xf32>
    %2 = vector.shape_cast %1 : vector<1x32x324xf32> to vector<32x324xf32>
    %cst_2 = arith.constant 0.000000e+00 : f32
    %3 = vector.broadcast %cst_2 : f32 to vector<32x324xf32>
    %4 = arith.maximumf %2, %3 : vector<32x324xf32>
    %5 = arith.truncf %4 : vector<32x324xf32> to vector<32x324xbf16>
    %c0_3 = arith.constant 0 : index
    %c0_4 = arith.constant 0 : index
    %c0_5 = arith.constant 0 : index
    %6 = vector.load %arg2[%c0_3, %c0_4, %c0_5] : memref<9x16x32xbf16, #tpu.memory_space<vmem>>, vector<1x16x32xbf16>
    %7 = vector.shape_cast %6 : vector<1x16x32xbf16> to vector<16x32xbf16>
    %cst_6 = arith.constant dense<0.000000e+00> : vector<16x324xf32>
    %8 = tpu.matmul %7, %5, %cst_6 {dimension_numbers = #tpu.dot_dimension_numbers<[1], [0], [0], [1], [0, 0, 1, 1], [], []>} : vector<16x32xbf16>, vector<32x324xbf16>, vector<16x324xf32> -> vector<16x324xf32>
    %9 = arith.addf %0, %8 : vector<16x324xf32>
    %c0_7 = arith.constant 0 : index
    %c0_8 = arith.constant 0 : index
    %c1 = arith.constant 1 : index
    %10 = vector.load %arg1[%c0_7, %c0_8, %c1] : memref<1x32x362xf32, #tpu.memory_space<vmem>>, vector<1x32x324xf32>
    %11 = vector.shape_cast %10 : vector<1x32x324xf32> to vector<32x324xf32>
    %cst_9 = arith.constant 0.000000e+00 : f32
    %12 = vector.broadcast %cst_9 : f32 to vector<32x324xf32>
    %13 = arith.maximumf %11, %12 : vector<32x324xf32>
    %14 = arith.truncf %13 : vector<32x324xf32> to vector<32x324xbf16>
    %c1_10 = arith.constant 1 : index
    %c0_11 = arith.constant 0 : index
    %c0_12 = arith.constant 0 : index
    %15 = vector.load %arg2[%c1_10, %c0_11, %c0_12] : memref<9x16x32xbf16, #tpu.memory_space<vmem>>, vector<1x16x32xbf16>
    %16 = vector.shape_cast %15 : vector<1x16x32xbf16> to vector<16x32xbf16>
    %cst_13 = arith.constant dense<0.000000e+00> : vector<16x324xf32>
    %17 = tpu.matmul %16, %14, %cst_13 {dimension_numbers = #tpu.dot_dimension_numbers<[1], [0], [0], [1], [0, 0, 1, 1], [], []>} : vector<16x32xbf16>, vector<32x324xbf16>, vector<16x324xf32> -> vector<16x324xf32>
    %18 = arith.addf %9, %17 : vector<16x324xf32>
    %c0_14 = arith.constant 0 : index
    %c0_15 = arith.constant 0 : index
    %c2 = arith.constant 2 : index
    %19 = vector.load %arg1[%c0_14, %c0_15, %c2] : memref<1x32x362xf32, #tpu.memory_space<vmem>>, vector<1x32x324xf32>
    %20 = vector.shape_cast %19 : vector<1x32x324xf32> to vector<32x324xf32>
    %cst_16 = arith.constant 0.000000e+00 : f32
    %21 = vector.broadcast %cst_16 : f32 to vector<32x324xf32>
    %22 = arith.maximumf %20, %21 : vector<32x324xf32>
    %23 = arith.truncf %22 : vector<32x324xf32> to vector<32x324xbf16>
    %c2_17 = arith.constant 2 : index
    %c0_18 = arith.constant 0 : index
    %c0_19 = arith.constant 0 : index
    %24 = vector.load %arg2[%c2_17, %c0_18, %c0_19] : memref<9x16x32xbf16, #tpu.memory_space<vmem>>, vector<1x16x32xbf16>
    %25 = vector.shape_cast %24 : vector<1x16x32xbf16> to vector<16x32xbf16>
    %cst_20 = arith.constant dense<0.000000e+00> : vector<16x324xf32>
    %26 = tpu.matmul %25, %23, %cst_20 {dimension_numbers = #tpu.dot_dimension_numbers<[1], [0], [0], [1], [0, 0, 1, 1], [], []>} : vector<16x32xbf16>, vector<32x324xbf16>, vector<16x324xf32> -> vector<16x324xf32>
    %27 = arith.addf %18, %26 : vector<16x324xf32>
    %c0_21 = arith.constant 0 : index
    %c0_22 = arith.constant 0 : index
    %c18 = arith.constant 18 : index
    %28 = vector.load %arg1[%c0_21, %c0_22, %c18] : memref<1x32x362xf32, #tpu.memory_space<vmem>>, vector<1x32x324xf32>
    %29 = vector.shape_cast %28 : vector<1x32x324xf32> to vector<32x324xf32>
    %cst_23 = arith.constant 0.000000e+00 : f32
    %30 = vector.broadcast %cst_23 : f32 to vector<32x324xf32>
    %31 = arith.maximumf %29, %30 : vector<32x324xf32>
    %32 = arith.truncf %31 : vector<32x324xf32> to vector<32x324xbf16>
    %c3 = arith.constant 3 : index
    %c0_24 = arith.constant 0 : index
    %c0_25 = arith.constant 0 : index
    %33 = vector.load %arg2[%c3, %c0_24, %c0_25] : memref<9x16x32xbf16, #tpu.memory_space<vmem>>, vector<1x16x32xbf16>
    %34 = vector.shape_cast %33 : vector<1x16x32xbf16> to vector<16x32xbf16>
    %cst_26 = arith.constant dense<0.000000e+00> : vector<16x324xf32>
    %35 = tpu.matmul %34, %32, %cst_26 {dimension_numbers = #tpu.dot_dimension_numbers<[1], [0], [0], [1], [0, 0, 1, 1], [], []>} : vector<16x32xbf16>, vector<32x324xbf16>, vector<16x324xf32> -> vector<16x324xf32>
    %36 = arith.addf %27, %35 : vector<16x324xf32>
    %c0_27 = arith.constant 0 : index
    %c0_28 = arith.constant 0 : index
    %c19 = arith.constant 19 : index
    %37 = vector.load %arg1[%c0_27, %c0_28, %c19] : memref<1x32x362xf32, #tpu.memory_space<vmem>>, vector<1x32x324xf32>
    %38 = vector.shape_cast %37 : vector<1x32x324xf32> to vector<32x324xf32>
    %cst_29 = arith.constant 0.000000e+00 : f32
    %39 = vector.broadcast %cst_29 : f32 to vector<32x324xf32>
    %40 = arith.maximumf %38, %39 : vector<32x324xf32>
    %41 = arith.truncf %40 : vector<32x324xf32> to vector<32x324xbf16>
    %c4 = arith.constant 4 : index
    %c0_30 = arith.constant 0 : index
    %c0_31 = arith.constant 0 : index
    %42 = vector.load %arg2[%c4, %c0_30, %c0_31] : memref<9x16x32xbf16, #tpu.memory_space<vmem>>, vector<1x16x32xbf16>
    %43 = vector.shape_cast %42 : vector<1x16x32xbf16> to vector<16x32xbf16>
    %cst_32 = arith.constant dense<0.000000e+00> : vector<16x324xf32>
    %44 = tpu.matmul %43, %41, %cst_32 {dimension_numbers = #tpu.dot_dimension_numbers<[1], [0], [0], [1], [0, 0, 1, 1], [], []>} : vector<16x32xbf16>, vector<32x324xbf16>, vector<16x324xf32> -> vector<16x324xf32>
    %45 = arith.addf %36, %44 : vector<16x324xf32>
    %c0_33 = arith.constant 0 : index
    %c0_34 = arith.constant 0 : index
    %c20 = arith.constant 20 : index
    %46 = vector.load %arg1[%c0_33, %c0_34, %c20] : memref<1x32x362xf32, #tpu.memory_space<vmem>>, vector<1x32x324xf32>
    %47 = vector.shape_cast %46 : vector<1x32x324xf32> to vector<32x324xf32>
    %cst_35 = arith.constant 0.000000e+00 : f32
    %48 = vector.broadcast %cst_35 : f32 to vector<32x324xf32>
    %49 = arith.maximumf %47, %48 : vector<32x324xf32>
    %50 = arith.truncf %49 : vector<32x324xf32> to vector<32x324xbf16>
    %c5 = arith.constant 5 : index
    %c0_36 = arith.constant 0 : index
    %c0_37 = arith.constant 0 : index
    %51 = vector.load %arg2[%c5, %c0_36, %c0_37] : memref<9x16x32xbf16, #tpu.memory_space<vmem>>, vector<1x16x32xbf16>
    %52 = vector.shape_cast %51 : vector<1x16x32xbf16> to vector<16x32xbf16>
    %cst_38 = arith.constant dense<0.000000e+00> : vector<16x324xf32>
    %53 = tpu.matmul %52, %50, %cst_38 {dimension_numbers = #tpu.dot_dimension_numbers<[1], [0], [0], [1], [0, 0, 1, 1], [], []>} : vector<16x32xbf16>, vector<32x324xbf16>, vector<16x324xf32> -> vector<16x324xf32>
    %54 = arith.addf %45, %53 : vector<16x324xf32>
    %c0_39 = arith.constant 0 : index
    %c0_40 = arith.constant 0 : index
    %c36 = arith.constant 36 : index
    %55 = vector.load %arg1[%c0_39, %c0_40, %c36] : memref<1x32x362xf32, #tpu.memory_space<vmem>>, vector<1x32x324xf32>
    %56 = vector.shape_cast %55 : vector<1x32x324xf32> to vector<32x324xf32>
    %cst_41 = arith.constant 0.000000e+00 : f32
    %57 = vector.broadcast %cst_41 : f32 to vector<32x324xf32>
    %58 = arith.maximumf %56, %57 : vector<32x324xf32>
    %59 = arith.truncf %58 : vector<32x324xf32> to vector<32x324xbf16>
    %c6 = arith.constant 6 : index
    %c0_42 = arith.constant 0 : index
    %c0_43 = arith.constant 0 : index
    %60 = vector.load %arg2[%c6, %c0_42, %c0_43] : memref<9x16x32xbf16, #tpu.memory_space<vmem>>, vector<1x16x32xbf16>
    %61 = vector.shape_cast %60 : vector<1x16x32xbf16> to vector<16x32xbf16>
    %cst_44 = arith.constant dense<0.000000e+00> : vector<16x324xf32>
    %62 = tpu.matmul %61, %59, %cst_44 {dimension_numbers = #tpu.dot_dimension_numbers<[1], [0], [0], [1], [0, 0, 1, 1], [], []>} : vector<16x32xbf16>, vector<32x324xbf16>, vector<16x324xf32> -> vector<16x324xf32>
    %63 = arith.addf %54, %62 : vector<16x324xf32>
    %c0_45 = arith.constant 0 : index
    %c0_46 = arith.constant 0 : index
    %c37 = arith.constant 37 : index
    %64 = vector.load %arg1[%c0_45, %c0_46, %c37] : memref<1x32x362xf32, #tpu.memory_space<vmem>>, vector<1x32x324xf32>
    %65 = vector.shape_cast %64 : vector<1x32x324xf32> to vector<32x324xf32>
    %cst_47 = arith.constant 0.000000e+00 : f32
    %66 = vector.broadcast %cst_47 : f32 to vector<32x324xf32>
    %67 = arith.maximumf %65, %66 : vector<32x324xf32>
    %68 = arith.truncf %67 : vector<32x324xf32> to vector<32x324xbf16>
    %c7 = arith.constant 7 : index
    %c0_48 = arith.constant 0 : index
    %c0_49 = arith.constant 0 : index
    %69 = vector.load %arg2[%c7, %c0_48, %c0_49] : memref<9x16x32xbf16, #tpu.memory_space<vmem>>, vector<1x16x32xbf16>
    %70 = vector.shape_cast %69 : vector<1x16x32xbf16> to vector<16x32xbf16>
    %cst_50 = arith.constant dense<0.000000e+00> : vector<16x324xf32>
    %71 = tpu.matmul %70, %68, %cst_50 {dimension_numbers = #tpu.dot_dimension_numbers<[1], [0], [0], [1], [0, 0, 1, 1], [], []>} : vector<16x32xbf16>, vector<32x324xbf16>, vector<16x324xf32> -> vector<16x324xf32>
    %72 = arith.addf %63, %71 : vector<16x324xf32>
    %c0_51 = arith.constant 0 : index
    %c0_52 = arith.constant 0 : index
    %c38 = arith.constant 38 : index
    %73 = vector.load %arg1[%c0_51, %c0_52, %c38] : memref<1x32x362xf32, #tpu.memory_space<vmem>>, vector<1x32x324xf32>
    %74 = vector.shape_cast %73 : vector<1x32x324xf32> to vector<32x324xf32>
    %cst_53 = arith.constant 0.000000e+00 : f32
    %75 = vector.broadcast %cst_53 : f32 to vector<32x324xf32>
    %76 = arith.maximumf %74, %75 : vector<32x324xf32>
    %77 = arith.truncf %76 : vector<32x324xf32> to vector<32x324xbf16>
    %c8 = arith.constant 8 : index
    %c0_54 = arith.constant 0 : index
    %c0_55 = arith.constant 0 : index
    %78 = vector.load %arg2[%c8, %c0_54, %c0_55] : memref<9x16x32xbf16, #tpu.memory_space<vmem>>, vector<1x16x32xbf16>
    %79 = vector.shape_cast %78 : vector<1x16x32xbf16> to vector<16x32xbf16>
    %cst_56 = arith.constant dense<0.000000e+00> : vector<16x324xf32>
    %80 = tpu.matmul %79, %77, %cst_56 {dimension_numbers = #tpu.dot_dimension_numbers<[1], [0], [0], [1], [0, 0, 1, 1], [], []>} : vector<16x32xbf16>, vector<32x324xbf16>, vector<16x324xf32> -> vector<16x324xf32>
    %81 = arith.addf %72, %80 : vector<16x324xf32>
    %cst_57 = arith.constant 0.000000e+00 : f32
    %82 = vector.broadcast %cst_57 : f32 to vector<16x324xf32>
    %83 = arith.maximumf %81, %82 : vector<16x324xf32>
    %84 = arith.truncf %83 : vector<16x324xf32> to vector<16x324xbf16>
    %c0_58 = arith.constant 0 : index
    %c0_59 = arith.constant 0 : index
    %85 = vector.load %arg3[%c0_58, %c0_59] : memref<32x16xbf16, #tpu.memory_space<vmem>>, vector<32x16xbf16>
    %cst_60 = arith.constant dense<0.000000e+00> : vector<32x324xf32>
    %86 = tpu.matmul %85, %84, %cst_60 {dimension_numbers = #tpu.dot_dimension_numbers<[1], [0], [0], [1], [0, 0, 1, 1], [], []>} : vector<32x16xbf16>, vector<16x324xbf16>, vector<32x324xf32> -> vector<32x324xf32>
    %c0_61 = arith.constant 0 : index
    %c0_62 = arith.constant 0 : index
    %c19_63 = arith.constant 19 : index
    %87 = vector.load %arg1[%c0_61, %c0_62, %c19_63] : memref<1x32x362xf32, #tpu.memory_space<vmem>>, vector<1x32x324xf32>
    %88 = vector.shape_cast %87 : vector<1x32x324xf32> to vector<32x324xf32>
    %89 = arith.addf %88, %86 : vector<32x324xf32>
    %c0_64 = arith.constant 0 : index
    %c0_65 = arith.constant 0 : index
    %c0_66 = arith.constant 0 : index
    %90 = vector.load %arg4[%c0_64, %c0_65, %c0_66] : memref<1x32x324xf32, #tpu.memory_space<vmem>>, vector<1x32x324xf32>
    %91 = vector.shape_cast %90 : vector<1x32x324xf32> to vector<32x324xf32>
    %92 = vector.shape_cast %89 : vector<32x324xf32> to vector<1x32x324xf32>
    tpu.vector_store %arg4[%c0_64, %c0_65, %c0_66], %92 {strides = array<i32>} : memref<1x32x324xf32, #tpu.memory_space<vmem>>, vector<1x32x324xf32>,
    return
  }
  func.func @transform_0(%arg0: i32) -> (i32, i32, i32) {
    %c0_i32 = arith.constant 0 : i32
    %c0_i32_0 = arith.constant 0 : i32
    %c0_i32_1 = arith.constant 0 : i32
    return %arg0, %c0_i32, %c0_i32_0 : i32, i32, i32
  }
  func.func @transform_1(%arg0: i32) -> (i32, i32, i32) {
    %c0_i32 = arith.constant 0 : i32
    %c0_i32_0 = arith.constant 0 : i32
    %c0_i32_1 = arith.constant 0 : i32
    %c0_i32_2 = arith.constant 0 : i32
    return %c0_i32, %c0_i32_0, %c0_i32_1 : i32, i32, i32
  }
  func.func @transform_2(%arg0: i32) -> (i32, i32) {
    %c0_i32 = arith.constant 0 : i32
    %c0_i32_0 = arith.constant 0 : i32
    %c0_i32_1 = arith.constant 0 : i32
    return %c0_i32, %c0_i32_0 : i32, i32
  }
  func.func @transform_3(%arg0: i32) -> (i32, i32, i32) {
    %c0_i32 = arith.constant 0 : i32
    %c0_i32_0 = arith.constant 0 : i32
    %c0_i32_1 = arith.constant 0 : i32
    return %arg0, %c0_i32, %c0_i32_0 : i32, i32, i32
  }
}

</mosaic_0001>

<bundles_post_ra>
// kernel: residual_block_forward.1
= control target key start
LH: loop header
LB: loop body
LE: loop exit
PB: predicated region body
PF: predicated region fallthrough
CT: control target
= control target key end

     0   :  { %s1917_s12 = smov 0   ;;  %s2241_s0 = inlined_call_operand.vmem [shape: f32[2,32,362], index: 0, kind: input, shape index: {}]   ;;  %s2242_s1 = inlined_call_operand.vmem [shape: bf16[9,16,32], index: 1, kind: input, shape index: {}]   ;;  %s2243_s2 = inlined_call_operand.vmem [shape: bf16[32,16], index: 2, kind: input, shape index: {}]   ;;  %s2244_s3 = inlined_call_operand.vmem [shape: f32[2,32,324], index: 3, kind: output, shape index: {}]  }
   0x1 LB: > { %s1615_s13 = sadd.s32 4294967295, %s1883_s12   ;;  %p1619_p0 = scmp.ge.s32.totalorder %s1883_s12, 1  ;;  %s1883_s12 = sphi %s1917_s12, %s13_s12  }
   0x2   : > { %p137_p1 = scmp.lt.s32.totalorder %s1883_s12, 3 }
   0x4   : > { %p138_p2 = pnand %p1619_p0, %p137_p1 }
   0x5   : > { %p161_p3 = scmp.lt.s32.totalorder (!%p138_p2), %s1615_s13, 1  ;;  %v1885_v0 = vmov (!%p138_p2), 0.0   ;;  %s1886_s18 = smov (!%p138_p2), 127   ;;  %vm1887_vm0 = vmmov (!%p138_p2), 0   ;;  %v1888_v29 = vmov (!%p138_p2), 0   ;;  %vm230_vm1 = vcmask (!%p138_p2), 1039360  }
   0x6   : > { %141 = sbr.rel (%p138_p2) target bundleno = 941 (0x3ad), region = 32  ;;  %1703 = vmatprep.subr.bf16.mxu1 (!%p138_p2), %v1885_v0  ;;  %1707 = vmatprep.mubr.msk.bf16.mxu1 (!%p138_p2), %vm1887_vm0, %v1885_v0  ;;  %s1889_s19 = smov (!%p138_p2), 126   ;;  %v1866_v39 = vld [vmem:[%s2242_s1 + $0x8] sm:$0xff] (!%p138_p2)   ;;  %vm241_vm2 = vcmask (!%p138_p2), 261120   ;;  %vm441_vm3 = vcmask (!%p138_p2), 1031168   ;;  %v1867_v48 = vld [vmem:[%s2242_s1] sm:$0xff] (!%p138_p2)  }
   0x7   : > { %277 = vmatprep.mubr.bf16.mxu0 (!%p138_p2), %v1888_v29  ;;  %s1890_s20 = smov (!%p138_p2), 110   ;;  %s1891_s21 = smov (!%p138_p2), 109   ;;  %vm565_vm4 = vcmask (!%p138_p2), 900096   ;;  %v1868_v59 = vld [vmem:[%s2242_s1 + $0x10] sm:$0xff] (!%p138_p2)   ;;  %vm689_vm5 = vcmask (!%p138_p2), 891904   ;;  %vm813_vm6 = vcmask (!%p138_p2), 883712  }
   0x8   : > { %s1892_s22 = smov (!%p138_p2), 108   ;;  %s1893_s23 = smov (!%p138_p2), 92   ;;  %vm937_vm7 = vcmask (!%p138_p2), 752640   ;;  %vm1061_vm8 = vcmask (!%p138_p2), 744448   ;;  %vm1185_vm9 = vcmask (!%p138_p2), 736256   ;;  %vm1312_vm10 = vcmask (!%p138_p2), 130048  }
   0x9   : > { %s1894_s24 = smov (!%p138_p2), 91   ;;  %s1895_s25 = smov (!%p138_p2), 90   ;;  %vm1457_vm11 = vcmask (!%p138_p2), 154624   ;;  %vm1549_vm12 = vcmask (!%p138_p2), 556032  }
   0xd   : > { %s2246_s13 = smov (!%p161_p3, %s1615_s13), 1 }
   0xe   : > { %s1845_s14 = smul.u32 96, %s2246_s13 }
  0x10   : > { %s165_s17 = scalar_lea.vmem %s2241_s0, %s1845_s14  ;;  %s2212_s28 = scalar_lea.vmem %s2244_s3, %s1845_s14 }
  0x11   : > { %v1934_v1 = vld [vmem:[%s165_s17 + $0x8] sm:$0xff]  ;;  %v1936_v2 = vld [vmem:[%s165_s17 + $0x20] sm:$0xff]  ;;  %v1942_v6 = vld [vmem:[%s165_s17 + $0x18] sm:$0xff] }
  0x12   : > { %v1938_v3 = vld [vmem:[%s165_s17] sm:$0xff]  ;;  %v185_v4 = vmax.f32 %v1934_v1, 0.0  ;;  %v188_v5 = vmax.f32 %v1936_v2, 0.0  ;;  %v1945_v8 = vld [vmem:[%s165_s17 + $0x10] sm:$0xff]  ;;  %v1947_v9 = vld [vmem:[%s165_s17 + $0x28] sm:$0xff]  ;;  %v187_v10 = vmax.f32 %v1942_v6, 0.0 }
  0x13   : > { %v184_v7 = vmax.f32 %v1938_v3, 0.0  ;;  %v186_v11 = vmax.f32 %v1945_v8, 0.0  ;;  %v189_v12 = vmax.f32 %v1947_v9, 0.0  ;;  %v1952_v13 = vld [vmem:[%s165_s17 + $0x38] sm:$0xff]  ;;  %v1954_v14 = vld [vmem:[%s165_s17 + $0x50] sm:$0xff]  ;;  %v1956_v15 = vld [vmem:[%s165_s17 + $0x40] sm:$0xff] }
  0x14   : > { %v1958_v16 = vpack.c.bf16 %v188_v5, %v185_v4  ;;  %v191_v17 = vmax.f32 %v1952_v13, 0.0  ;;  %v194_v18 = vmax.f32 %v1954_v14, 0.0  ;;  %v1962_v19 = vld [vmem:[%s165_s17 + $0x58] sm:$0xff]  ;;  %v1964_v20 = vld [vmem:[%s165_s17 + $0x30] sm:$0xff]  ;;  %v1966_v21 = vld [vmem:[%s165_s17 + $0x48] sm:$0xff]  ;;  %v192_v23 = vmax.f32 %v1956_v15, 0.0 }
  0x15   : > { %v1968_v22 = vpack.c.bf16 %v187_v10, %v184_v7  ;;  %v1972_v24 = vpack.c.bf16 %v189_v12, %v186_v11  ;;  %v195_v25 = vmax.f32 %v1962_v19, 0.0  ;;  %v190_v26 = vmax.f32 %v1964_v20, 0.0 }
  0x16   : > { %220 = vrot.lane.b32.xlu0 %v1958_v16, %s1886_s18  ;;  %v1977_v27 = vpack.c.bf16 %v194_v18, %v191_v17  ;;  %v193_v28 = vmax.f32 %v1966_v21, 0.0 }
  0x17   : > { %218 = vrot.lane.b32.xlu1 %v1968_v22, %s1886_s18  ;;  %v1984_v30 = vpack.c.bf16 %v195_v25, %v192_v23 }
  0x18   : > { %v1987_v31 = vpack.c.bf16 %v193_v28, %v190_v26 }
  0x1a   : > { %222 = vrot.lane.b32.xlu0 %v1972_v24, %s1886_s18 }
  0x1b   : > { %226 = vrot.lane.b32.xlu1 %v1977_v27, %s1886_s18 }
  0x1e   : > { %228 = vrot.lane.b32.xlu0 %v1984_v30, %s1886_s18 }
  0x1f   : > { %224 = vrot.lane.b32.xlu1 %v1987_v31, %s1886_s18 }
  0x22   : > { %431 = vrot.lane.b32.xlu0 %v1958_v16, %s1889_s19 }
  0x23   : > { %433 = vrot.lane.b32.xlu1 %v1972_v24, %s1889_s19 }
  0x26   : > { %429 = vrot.lane.b32.xlu0 %v1968_v22, %s1889_s19 }
  0x27   : > { %437 = vrot.lane.b32.xlu1 %v1977_v27, %s1889_s19 }
  0x2a   : > { %439 = vrot.lane.b32.xlu0 %v1984_v30, %s1889_s19 }
  0x2b   : > { %435 = vrot.lane.b32.xlu1 %v1987_v31, %s1889_s19 }
  0x2e   : > { %555 = vrot.lane.b32.xlu0 %v1958_v16, %s1890_s20 }
  0x2f   : > { %557 = vrot.lane.b32.xlu1 %v1972_v24, %s1890_s20 }
  0x32   : > { %553 = vrot.lane.b32.xlu0 %v1968_v22, %s1890_s20 }
  0x33   : > { %561 = vrot.lane.b32.xlu1 %v1977_v27, %s1890_s20 }
  0x36   : > { %563 = vrot.lane.b32.xlu0 %v1984_v30, %s1890_s20 }
  0x37   : > { %559 = vrot.lane.b32.xlu1 %v1987_v31, %s1890_s20 }
  0x3a   : > { %679 = vrot.lane.b32.xlu0 %v1958_v16, %s1891_s21 }
  0x3b   : > { %681 = vrot.lane.b32.xlu1 %v1972_v24, %s1891_s21 }
  0x3e   : > { %677 = vrot.lane.b32.xlu0 %v1968_v22, %s1891_s21 }
  0x3f   : > { %685 = vrot.lane.b32.xlu1 %v1977_v27, %s1891_s21 }
  0x42   : > { %687 = vrot.lane.b32.xlu0 %v1984_v30, %s1891_s21 }
  0x43   : > { %683 = vrot.lane.b32.xlu1 %v1987_v31, %s1891_s21 }
  0x46   : > { %803 = vrot.lane.b32.xlu0 %v1958_v16, %s1892_s22 }
  0x47   : > { %805 = vrot.lane.b32.xlu1 %v1972_v24, %s1892_s22 }
  0x4a   : > { %801 = vrot.lane.b32.xlu0 %v1968_v22, %s1892_s22 }
  0x4b   : > { %809 = vrot.lane.b32.xlu1 %v1977_v27, %s1892_s22 }
  0x4e   : > { %811 = vrot.lane.b32.xlu0 %v1984_v30, %s1892_s22 }
  0x4f   : > { %807 = vrot.lane.b32.xlu1 %v1987_v31, %s1892_s22 }
  0x52   : > { %927 = vrot.lane.b32.xlu0 %v1958_v16, %s1893_s23 }
  0x53   : > { %929 = vrot.lane.b32.xlu1 %v1972_v24, %s1893_s23 }
  0x56   : > { %925 = vrot.lane.b32.xlu0 %v1968_v22, %s1893_s23 }
  0x57   : > { %933 = vrot.lane.b32.xlu1 %v1977_v27, %s1893_s23 }
  0x5a   : > { %935 = vrot.lane.b32.xlu0 %v1984_v30, %s1893_s23 }
  0x5b   : > { %931 = vrot.lane.b32.xlu1 %v1987_v31, %s1893_s23 }
  0x5e   : > { %1051 = vrot.lane.b32.xlu0 %v1958_v16, %s1894_s24 }
  0x5f   : > { %1053 = vrot.lane.b32.xlu1 %v1972_v24, %s1894_s24 }
  0x62   : > { %1049 = vrot.lane.b32.xlu0 %v1968_v22, %s1894_s24 }
  0x63   : > { %1057 = vrot.lane.b32.xlu1 %v1977_v27, %s1894_s24 }
  0x66   : > { %1059 = vrot.lane.b32.xlu0 %v1984_v30, %s1894_s24 }
  0x67   : > { %1055 = vrot.lane.b32.xlu1 %v1987_v31, %s1894_s24 }
  0x6a   : > { %1175 = vrot.lane.b32.xlu0 %v1958_v16, %s1895_s25 }
  0x6b   : > { %1177 = vrot.lane.b32.xlu1 %v1972_v24, %s1895_s25 }
  0x6e   : > { %1173 = vrot.lane.b32.xlu0 %v1968_v22, %s1895_s25 }
  0x6f   : > { %1181 = vrot.lane.b32.xlu1 %v1977_v27, %s1895_s25 }
  0x72   : > { %1183 = vrot.lane.b32.xlu0 %v1984_v30, %s1895_s25 }
  0x73   : > { %1179 = vrot.lane.b32.xlu1 %v1987_v31, %s1895_s25  ;;  %s1896_s25 = smov 19  }
  0x88   : > { %v221_v32 = vpop.permute.xlu0 %220 }
  0x89   : > { %v219_v33 = vpop.permute.xlu1 %218 }
  0x8a   : > { %v231_v37 = vsel %vm230_vm1, %v219_v33, %v221_v32 }
  0x8c   : > { %v223_v34 = vpop.permute.xlu0 %222 }
  0x8d   : > { %1704 = vmatpush3.bf16.msra.mxu1 %v223_v34  ;;  %v227_v35 = vpop.permute.xlu1 %226  ;;  %v232_v36 = vsel %vm230_vm1, %v221_v32, %v223_v34 }
  0x8e   : > { %245 = vmatprep.subr.bf16.mxu0 %v232_v36  ;;  %1705 = vmatprep.subr.bf16.mxu1 %v1885_v0 }
  0x8f   : > { %246 = vmatpush1.bf16.msra.mxu0 %v231_v37 }
  0x90   : > { %v229_v38 = vpop.permute.xlu0 %228 }
  0x91   : > { %1706 = vmatpush3.bf16.msra.mxu1 %v229_v38  ;;  %v225_v40 = vpop.permute.xlu1 %224  ;;  %v234_v41 = vsel %vm230_vm1, %v227_v35, %v229_v38 }
  0x92   : > { %247 = vmatprep.subr.bf16.mxu0 %v234_v41  ;;  %v233_v42 = vsel %vm230_vm1, %v225_v40, %v227_v35  ;;  %1711 = vmatprep.subr.bf16.mxu1 %v1885_v0 }
  0x93   : > { %248 = vmatpush1.bf16.msra.mxu0 %v233_v42  ;;  %v1871_v42 = vld [vmem:[%s2242_s1 + $0x28] sm:$0xff]  }
  0x94   : > { %1708 = vmatmul.mubr.msk.bf16.vlgmr.msra.gmra.mrb[0].mxu1 %vm241_vm2, %v1866_v39  ;;  %337 = vmatprep.subr.bf16.mxu0 %v1958_v16  ;;  %v432_v43 = vpop.permute.xlu0 %431  ;;  %v1869_v16 = vld [vmem:[%s2242_s1 + $0x18] sm:$0xff]  }
  0x95   : > { %1712 = vmatpush3.bf16.msra.mxu1 %v1972_v24  ;;  %1715 = vmatprep.mubr.msk.bf16.mxu1 %vm1887_vm0, %v1885_v0  ;;  %v434_v44 = vpop.permute.xlu1 %433 }
  0x96   : > { %1625 = vmatmul.mubr.msk.bf16.vlgmr.msra.gmra.mrb[0].mxu0 %vm241_vm2, %v1866_v39  ;;  %1713 = vmatprep.subr.bf16.mxu1 %v1885_v0  ;;  %v443_v46 = vsel %vm441_vm3, %v432_v43, %v434_v44 }
  0x97   : > { %338 = vmatpush1.bf16.msra.mxu0 %v1968_v22  ;;  %369 = vmatprep.mubr.bf16.mxu0 %v1888_v29 }
  0x98   : > { %339 = vmatprep.subr.bf16.mxu0 %v1977_v27  ;;  %v430_v45 = vpop.permute.xlu0 %429 }
  0x99   : > { %1714 = vmatpush3.bf16.msra.mxu1 %v1984_v30  ;;  %v438_v47 = vpop.permute.xlu1 %437  ;;  %v442_v51 = vsel %vm441_vm3, %v430_v45, %v432_v43 }
  0x9a   : > { %1719 = vmatprep.subr.bf16.mxu1 %v1885_v0 }
  0x9b   : > { %340 = vmatpush1.bf16.msra.mxu0 %v1987_v31  ;;  %v1870_v31 = vld [vmem:[%s2242_s1 + $0x20] sm:$0xff]  }
  0x9c   : > { %455 = vmatprep.subr.bf16.mxu0 %v443_v46  ;;  %v440_v49 = vpop.permute.xlu0 %439 }
  0x9d   : > { %v436_v50 = vpop.permute.xlu1 %435  ;;  %v445_v53 = vsel %vm441_vm3, %v438_v47, %v440_v49 }
  0x9e   : > { %v444_v55 = vsel %vm441_vm3, %v436_v50, %v438_v47 }
  0xa0   : > { %1716 = vmatmul.mubr.msk.bf16.vlgmr.msra.gmra.mrb[0].mxu1 %vm241_vm2, %v1867_v48  ;;  %v556_v52 = vpop.permute.xlu0 %555 }
  0xa1   : > { %1720 = vmatpush3.bf16.msra.mxu1 %v434_v44  ;;  %1723 = vmatprep.mubr.msk.bf16.mxu1 %vm1887_vm0, %v1885_v0  ;;  %v558_v54 = vpop.permute.xlu1 %557 }
  0xa2   : > { %1628 = vmatmul.mubr.msk.bf16.vlgmr.msra.gmra.mrb[0].mxu0 %vm241_vm2, %v1867_v48  ;;  %1721 = vmatprep.subr.bf16.mxu1 %v1885_v0  ;;  %v567_v57 = vsel %vm565_vm4, %v556_v52, %v558_v54 }
  0xa3   : > { %456 = vmatpush1.bf16.msra.mxu0 %v442_v51  ;;  %487 = vmatprep.mubr.bf16.mxu0 %v1888_v29 }
  0xa4   : > { %457 = vmatprep.subr.bf16.mxu0 %v445_v53  ;;  %v554_v56 = vpop.permute.xlu0 %553  ;;  %v1872_v53 = vld [vmem:[%s2242_s1 + $0x30] sm:$0xff]  }
  0xa5   : > { %1722 = vmatpush3.bf16.msra.mxu1 %v440_v49  ;;  %v562_v58 = vpop.permute.xlu1 %561  ;;  %v566_v62 = vsel %vm565_vm4, %v554_v56, %v556_v52 }
  0xa6   : > { %1727 = vmatprep.subr.bf16.mxu1 %v1885_v0 }
  0xa7   : > { %458 = vmatpush1.bf16.msra.mxu0 %v444_v55 }
  0xa8   : > { %579 = vmatprep.subr.bf16.mxu0 %v567_v57  ;;  %v564_v60 = vpop.permute.xlu0 %563 }
  0xa9   : > { %v560_v61 = vpop.permute.xlu1 %559  ;;  %v569_v4 = vsel %vm565_vm4, %v562_v58, %v564_v60 }
  0xaa   : > { %v568_v7 = vsel %vm565_vm4, %v560_v61, %v562_v58 }
  0xac   : > { %1724 = vmatmul.mubr.msk.bf16.vlgmr.msra.gmra.mrb[0].mxu1 %vm241_vm2, %v1868_v59  ;;  %v680_v63 = vpop.permute.xlu0 %679 }
  0xad   : > { %1728 = vmatpush3.bf16.msra.mxu1 %v558_v54  ;;  %1731 = vmatprep.mubr.msk.bf16.mxu1 %vm1887_vm0, %v1885_v0  ;;  %v682_v5 = vpop.permute.xlu1 %681 }
  0xae   : > { %1633 = vmatmul.mubr.msk.bf16.vlgmr.msra.gmra.mrb[0].mxu0 %vm241_vm2, %v1868_v59  ;;  %1729 = vmatprep.subr.bf16.mxu1 %v1885_v0  ;;  %v691_v11 = vsel %vm689_vm5, %v680_v63, %v682_v5 }
  0xaf   : > { %580 = vmatpush1.bf16.msra.mxu0 %v566_v62  ;;  %611 = vmatprep.mubr.bf16.mxu0 %v1888_v29 }
  0xb0   : > { %581 = vmatprep.subr.bf16.mxu0 %v569_v4  ;;  %v678_v10 = vpop.permute.xlu0 %677  ;;  %v1873_v4 = vld [vmem:[%s2242_s1 + $0x38] sm:$0xff]  }
  0xb1   : > { %1730 = vmatpush3.bf16.msra.mxu1 %v564_v60  ;;  %v686_v12 = vpop.permute.xlu1 %685  ;;  %v690_v22 = vsel %vm689_vm5, %v678_v10, %v680_v63 }
  0xb2   : > { %1735 = vmatprep.subr.bf16.mxu1 %v1885_v0 }
  0xb3   : > { %582 = vmatpush1.bf16.msra.mxu0 %v568_v7 }
  0xb4   : > { %703 = vmatprep.subr.bf16.mxu0 %v691_v11  ;;  %v688_v17 = vpop.permute.xlu0 %687 }
  0xb5   : > { %v684_v18 = vpop.permute.xlu1 %683  ;;  %v693_v24 = vsel %vm689_vm5, %v686_v12, %v688_v17 }
  0xb6   : > { %v692_v26 = vsel %vm689_vm5, %v684_v18, %v686_v12 }
  0xb8   : > { %1732 = vmatmul.mubr.msk.bf16.vlgmr.msra.gmra.mrb[0].mxu1 %vm241_vm2, %v1869_v16  ;;  %v804_v23 = vpop.permute.xlu0 %803 }
  0xb9   : > { %1736 = vmatpush3.bf16.msra.mxu1 %v682_v5  ;;  %1739 = vmatprep.mubr.msk.bf16.mxu1 %vm1887_vm0, %v1885_v0  ;;  %v806_v25 = vpop.permute.xlu1 %805 }
  0xba   : > { %1638 = vmatmul.mubr.msk.bf16.vlgmr.msra.gmra.mrb[0].mxu0 %vm241_vm2, %v1869_v16  ;;  %1737 = vmatprep.subr.bf16.mxu1 %v1885_v0  ;;  %v815_v28 = vsel %vm813_vm6, %v804_v23, %v806_v25  ;;  %v1874_v16 = vld [vmem:[%s2242_s1 + $0x40] sm:$0xff]  }
  0xbb   : > { %704 = vmatpush1.bf16.msra.mxu0 %v690_v22  ;;  %735 = vmatprep.mubr.bf16.mxu0 %v1888_v29 }
  0xbc   : > { %705 = vmatprep.subr.bf16.mxu0 %v693_v24  ;;  %v802_v27 = vpop.permute.xlu0 %801 }
  0xbd   : > { %1738 = vmatpush3.bf16.msra.mxu1 %v688_v17  ;;  %v810_v30 = vpop.permute.xlu1 %809  ;;  %v814_v34 = vsel %vm813_vm6, %v802_v27, %v804_v23 }
  0xbe   : > { %1743 = vmatprep.subr.bf16.mxu1 %v1885_v0 }
  0xbf   : > { %706 = vmatpush1.bf16.msra.mxu0 %v692_v26 }
  0xc0   : > { %827 = vmatprep.subr.bf16.mxu0 %v815_v28  ;;  %v812_v32 = vpop.permute.xlu0 %811 }
  0xc1   : > { %v808_v33 = vpop.permute.xlu1 %807  ;;  %v817_v36 = vsel %vm813_vm6, %v810_v30, %v812_v32 }
  0xc2   : > { %v816_v38 = vsel %vm813_vm6, %v808_v33, %v810_v30 }
  0xc4   : > { %1740 = vmatmul.mubr.msk.bf16.vlgmr.msra.gmra.mrb[0].mxu1 %vm241_vm2, %v1870_v31  ;;  %v928_v35 = vpop.permute.xlu0 %927 }
  0xc5   : > { %1744 = vmatpush3.bf16.msra.mxu1 %v806_v25  ;;  %1747 = vmatprep.mubr.msk.bf16.mxu1 %vm1887_vm0, %v1885_v0  ;;  %v930_v37 = vpop.permute.xlu1 %929 }
  0xc6   : > { %1643 = vmatmul.mubr.msk.bf16.vlgmr.msra.gmra.mrb[0].mxu0 %vm241_vm2, %v1870_v31  ;;  %1745 = vmatprep.subr.bf16.mxu1 %v1885_v0  ;;  %v939_v40 = vsel %vm937_vm7, %v928_v35, %v930_v37 }
  0xc7   : > { %828 = vmatpush1.bf16.msra.mxu0 %v814_v34  ;;  %859 = vmatprep.mubr.bf16.mxu0 %v1888_v29 }
  0xc8   : > { %829 = vmatprep.subr.bf16.mxu0 %v817_v36  ;;  %v926_v39 = vpop.permute.xlu0 %925 }
  0xc9   : > { %1746 = vmatpush3.bf16.msra.mxu1 %v812_v32  ;;  %v934_v41 = vpop.permute.xlu1 %933  ;;  %v938_v45 = vsel %vm937_vm7, %v926_v39, %v928_v35 }
  0xca   : > { %1751 = vmatprep.subr.bf16.mxu1 %v1885_v0 }
  0xcb   : > { %830 = vmatpush1.bf16.msra.mxu0 %v816_v38 }
  0xcc   : > { %951 = vmatprep.subr.bf16.mxu0 %v939_v40  ;;  %v936_v43 = vpop.permute.xlu0 %935 }
  0xcd   : > { %v932_v44 = vpop.permute.xlu1 %931  ;;  %v941_v47 = vsel %vm937_vm7, %v934_v41, %v936_v43 }
  0xce   : > { %v940_v49 = vsel %vm937_vm7, %v932_v44, %v934_v41 }
  0xd0   : > { %1748 = vmatmul.mubr.msk.bf16.vlgmr.msra.gmra.mrb[0].mxu1 %vm241_vm2, %v1871_v42  ;;  %v1052_v46 = vpop.permute.xlu0 %1051 }
  0xd1   : > { %1752 = vmatpush3.bf16.msra.mxu1 %v930_v37  ;;  %1755 = vmatprep.mubr.msk.bf16.mxu1 %vm1887_vm0, %v1885_v0  ;;  %v1054_v48 = vpop.permute.xlu1 %1053  ;;  %v1876_v37 = vld [vmem:[%s2243_s2 + $0x8] sm:$0xff]  }
  0xd2   : > { %1648 = vmatmul.mubr.msk.bf16.vlgmr.msra.gmra.mrb[0].mxu0 %vm241_vm2, %v1871_v42  ;;  %1753 = vmatprep.subr.bf16.mxu1 %v1885_v0  ;;  %v1063_v51 = vsel %vm1061_vm8, %v1052_v46, %v1054_v48 }
  0xd3   : > { %952 = vmatpush1.bf16.msra.mxu0 %v938_v45  ;;  %983 = vmatprep.mubr.bf16.mxu0 %v1888_v29 }
  0xd4   : > { %953 = vmatprep.subr.bf16.mxu0 %v941_v47  ;;  %v1050_v50 = vpop.permute.xlu0 %1049 }
  0xd5   : > { %1754 = vmatpush3.bf16.msra.mxu1 %v936_v43  ;;  %v1058_v52 = vpop.permute.xlu1 %1057  ;;  %v1062_v56 = vsel %vm1061_vm8, %v1050_v50, %v1052_v46 }
  0xd6   : > { %1759 = vmatprep.subr.bf16.mxu1 %v1885_v0 }
  0xd7   : > { %954 = vmatpush1.bf16.msra.mxu0 %v940_v49 }
  0xd8   : > { %1075 = vmatprep.subr.bf16.mxu0 %v1063_v51  ;;  %v1060_v54 = vpop.permute.xlu0 %1059 }
  0xd9   : > { %v1056_v55 = vpop.permute.xlu1 %1055  ;;  %v1065_v58 = vsel %vm1061_vm8, %v1058_v52, %v1060_v54 }
  0xda   : > { %v1064_v60 = vsel %vm1061_vm8, %v1056_v55, %v1058_v52 }
  0xdc   : > { %1756 = vmatmul.mubr.msk.bf16.vlgmr.msra.gmra.mrb[0].mxu1 %vm241_vm2, %v1872_v53  ;;  %v1176_v57 = vpop.permute.xlu0 %1175 }
  0xdd   : > { %1760 = vmatpush3.bf16.msra.mxu1 %v1054_v48  ;;  %1763 = vmatprep.mubr.msk.bf16.mxu1 %vm1887_vm0, %v1885_v0  ;;  %v1178_v59 = vpop.permute.xlu1 %1177 }
  0xde   : > { %1653 = vmatmul.mubr.msk.bf16.vlgmr.msra.gmra.mrb[0].mxu0 %vm241_vm2, %v1872_v53  ;;  %1761 = vmatprep.subr.bf16.mxu1 %v1885_v0  ;;  %v1187_v61 = vsel %vm1185_vm9, %v1176_v57, %v1178_v59 }
  0xdf   : > { %1076 = vmatpush1.bf16.msra.mxu0 %v1062_v56  ;;  %1107 = vmatprep.mubr.bf16.mxu0 %v1888_v29 }
  0xe0   : > { %1077 = vmatprep.subr.bf16.mxu0 %v1065_v58  ;;  %v1174_v62 = vpop.permute.xlu0 %1173 }
  0xe1   : > { %1762 = vmatpush3.bf16.msra.mxu1 %v1060_v54  ;;  %v1182_v63 = vpop.permute.xlu1 %1181  ;;  %v1186_v7 = vsel %vm1185_vm9, %v1174_v62, %v1176_v57 }
  0xe2   : > { %1767 = vmatprep.subr.bf16.mxu1 %v1885_v0 }
  0xe3   : > { %1078 = vmatpush1.bf16.msra.mxu0 %v1064_v60 }
  0xe4   : > { %1199 = vmatprep.subr.bf16.mxu0 %v1187_v61  ;;  %v1184_v5 = vpop.permute.xlu0 %1183 }
  0xe5   : > { %v1180_v10 = vpop.permute.xlu1 %1179  ;;  %v1189_v11 = vsel %vm1185_vm9, %v1182_v63, %v1184_v5 }
  0xe6   : > { %v1188_v12 = vsel %vm1185_vm9, %v1180_v10, %v1182_v63 }
  0xe8   : > { %1764 = vmatmul.mubr.msk.bf16.vlgmr.msra.gmra.mrb[0].mxu1 %vm241_vm2, %v1873_v4 }
  0xe9   : > { %1768 = vmatpush3.bf16.msra.mxu1 %v1178_v59  ;;  %1771 = vmatprep.mubr.msk.bf16.mxu1 %vm1887_vm0, %v1885_v0 }
  0xea   : > { %1658 = vmatmul.mubr.msk.bf16.vlgmr.msra.gmra.mrb[0].mxu0 %vm241_vm2, %v1873_v4  ;;  %1769 = vmatprep.subr.bf16.mxu1 %v1885_v0  ;;  %v1875_v0 = vld [vmem:[%s2243_s2] sm:$0xff]  }
  0xeb   : > { %1200 = vmatpush1.bf16.msra.mxu0 %v1186_v7  ;;  %1231 = vmatprep.mubr.bf16.mxu0 %v1888_v29 }
  0xec   : > { %1201 = vmatprep.subr.bf16.mxu0 %v1189_v11 }
  0xed   : > { %1770 = vmatpush3.bf16.msra.mxu1 %v1184_v5 }
  0xef   : > { %1202 = vmatpush1.bf16.msra.mxu0 %v1188_v12 }
  0xf4   : > { %1772 = vmatmul.mubr.msk.bf16.vlgmr.msra.gmra.mrb[0].mxu1 %vm241_vm2, %v1874_v16 }
  0xf5   : > { %1777 = vmatprep.mubr.msk.bf16.mxu1 %vm1312_vm10, %v1875_v0 }
  0xf6   : > { %1663 = vmatmul.mubr.msk.bf16.vlgmr.msra.gmra.mrb[0].mxu0 %vm241_vm2, %v1874_v16 }
  0xf7   : > { %1351 = vmatprep.mubr.bf16.mxu0 %v1888_v29 }
 0x1c7   : > { %v1276_v17 = vpop.f32.mrb[0].mxu1 }
 0x1c8   : > { %v1773_v18 = vpop.f32.mrb[1].mxu1  ;;  %v1291_v24 = vmax.f32 %v1276_v17, 0.0 }
 0x1c9   : > { %v1233_v22 = vpop.f32.mrb[0].mxu0  ;;  %v1279_v23 = vpop.f32.mrb[2].mxu1 }
 0x1ca   : > { %v1294_v25 = vmax.f32 %v1279_v23, 0.0  ;;  %v1235_v26 = vpop.f32.mrb[1].mxu0  ;;  %v1774_v27 = vpop.f32.mrb[3].mxu1  ;;  %v1289_v30 = vmax.f32 %v1233_v22, 0.0 }
 0x1cb   : > { %v1237_v28 = vpop.f32.mrb[2].mxu0  ;;  %v1290_v34 = vmax.f32 %v1235_v26, 0.0 }
 0x1cc   : > { %v1297_v31 = vpack.c.bf16 %v1294_v25, %v1291_v24  ;;  %v1292_v32 = vmax.f32 %v1237_v28, 0.0  ;;  %v1239_v33 = vpop.f32.mrb[3].mxu0 }
 0x1cd   : > { %v1293_v35 = vmax.f32 %v1239_v33, 0.0 }
 0x1ce   : > { %v1295_v36 = vpack.c.bf16 %v1292_v32, %v1289_v30  ;;  %1775 = vmatprep.subr.bf16.mxu1 %v1297_v31 }
 0x1cf   : > { %v1296_v38 = vpack.c.bf16 %v1293_v35, %v1290_v34  ;;  %1776 = vmatpush3.bf16.msra.mxu1 %v1297_v31 }
 0x1d1   : > { %1319 = vmatprep.subr.bf16.mxu0 %v1296_v38 }
 0x1d2   : > { %1320 = vmatpush1.bf16.msra.mxu0 %v1295_v36  ;;  %1778 = vmatmul.mubr.msk.bf16.vlgmr.msra.gmra.mrb[4].mxu1 %vm1312_vm10, %v1876_v37 }
 0x1d5   : > { %1667 = vmatmul.mubr.msk.bf16.vlgmr.msra.gmra.mrb[4].mxu0 %vm1312_vm10, %v1875_v0 }
 0x1d6   : > { %1361 = vmatprep.mubr.bf16.mxu0 %v1888_v29 }
 0x1dd   : > { %1668 = vmatmul.mubr.msk.bf16.gmra.mrb[8].mxu0 %vm1312_vm10, %v1876_v37 }
 0x2a5   : > { %v1779_v39 = vpop.f32.mrb[4].mxu1 }
 0x2a6   : > { %1449 = vrot.lane.b32.xlu0 %v1779_v39, %s1896_s25  ;;  %v1406_v40 = vpop.f32.mrb[5].mxu1 }
 0x2a7   : > { %v1780_v41 = vpop.f32.mrb[6].mxu1 }
 0x2a8   : > { %v1409_v42 = vpop.f32.mrb[7].mxu1  ;;  %v1353_v43 = vpop.f32.mrb[4].mxu0 }
 0x2a9   : > { %1443 = vrot.lane.b32.xlu1 %v1409_v42, %s1896_s25  ;;  %v1355_v44 = vpop.f32.mrb[5].mxu0 }
 0x2aa   : > { %1437 = vrot.lane.b32.xlu0 %v1406_v40, %s1896_s25  ;;  %v1357_v45 = vpop.f32.mrb[6].mxu0 }
 0x2ab   : > { %v1359_v46 = vpop.f32.mrb[7].mxu0 }
 0x2ad   : > { %1435 = vrot.lane.b32.xlu1 %v1355_v44, %s1896_s25 }
 0x2ae   : > { %1433 = vrot.lane.b32.xlu0 %v1353_v43, %s1896_s25 }
 0x2b0   : > { %v1363_v47 = vpop.f32.mrb[8].mxu0 }
 0x2b1   : > { %1439 = vrot.lane.b32.xlu1 %v1357_v45, %s1896_s25  ;;  %v1365_v48 = vpop.f32.mrb[9].mxu0 }
 0x2b2   : > { %1441 = vrot.lane.b32.xlu0 %v1359_v46, %s1896_s25  ;;  %v1367_v29 = vpop.f32.mrb[10].mxu0 }
 0x2b3   : > { %v1369_v49 = vpop.f32.mrb[11].mxu0 }
 0x2b5   : > { %1447 = vrot.lane.b32.xlu1 %v1365_v48, %s1896_s25 }
 0x2b6   : > { %1445 = vrot.lane.b32.xlu0 %v1363_v47, %s1896_s25 }
 0x2b9   : > { %1451 = vrot.lane.b32.xlu1 %v1367_v29, %s1896_s25 }
 0x2ba   : > { %1453 = vrot.lane.b32.xlu0 %v1369_v49, %s1896_s25 }
 0x2bd   : > { %1455 = vrot.lane.b32.xlu1 %v1780_v41, %s1896_s25 }
 0x318   : > { %v1450_v50 = vpop.permute.xlu0 %1449 }
 0x31b   : > { %v1444_v51 = vpop.permute.xlu1 %1443 }
 0x31c   : > { %v1438_v52 = vpop.permute.xlu0 %1437 }
 0x31f   : > { %v1436_v53 = vpop.permute.xlu1 %1435 }
 0x320   : > { %v1434_v54 = vpop.permute.xlu0 %1433  ;;  %v1459_v57 = vsel %vm1457_vm11, %v1436_v53, %v1438_v52 }
 0x321   : > { %v1458_v55 = vsel %vm1457_vm11, %v1434_v54, %v1436_v53  ;;  %v1478_v56 = vadd.f32 %v1434_v54, %v1938_v3  ;;  %v1480_v61 = vadd.f32 %v1459_v57, %v1945_v8 }
 0x322   : > { %v1479_v58 = vadd.f32 %v1458_v55, %v1934_v1 }
 0x323   : > { %1502 = vrot.lane.b32.xlu0 %v1478_v56, %s1891_s21  ;;  %v1440_v59 = vpop.permute.xlu1 %1439 }
 0x324   : > { %v1442_v60 = vpop.permute.xlu0 %1441  ;;  %1504 = vrot.lane.b32.xlu1 %v1479_v58, %s1891_s21  ;;  %v1481_v62 = vadd.f32 %v1440_v59, %v1942_v6 }
 0x325   : > { %v1460_v63 = vsel %vm1457_vm11, %v1440_v59, %v1442_v60  ;;  %v1461_v4 = vsel %vm1457_vm11, %v1442_v60, %v1444_v51 }
 0x326   : > { %v1482_v5 = vadd.f32 %v1460_v63, %v1936_v2  ;;  %v1483_v10 = vadd.f32 %v1461_v4, %v1947_v9 }
 0x327   : > { %1506 = vrot.lane.b32.xlu0 %v1480_v61, %s1891_s21  ;;  %v1448_v3 = vpop.permute.xlu1 %1447 }
 0x328   : > { %1508 = vrot.lane.b32.xlu1 %v1481_v62, %s1891_s21  ;;  %v1446_v1 = vpop.permute.xlu0 %1445  ;;  %v1463_v12 = vsel %vm1457_vm11, %v1448_v3, %v1450_v50 }
 0x329   : > { %v1462_v7 = vsel %vm1457_vm11, %v1446_v1, %v1448_v3  ;;  %v1484_v8 = vadd.f32 %v1446_v1, %v1964_v20  ;;  %v1486_v9 = vadd.f32 %v1463_v12, %v1956_v15 }
 0x32a   : > { %v1485_v11 = vadd.f32 %v1462_v7, %v1952_v13 }
 0x32b   : > { %1510 = vrot.lane.b32.xlu0 %v1482_v5, %s1891_s21  ;;  %v1452_v6 = vpop.permute.xlu1 %1451 }
 0x32c   : > { %1512 = vrot.lane.b32.xlu1 %v1483_v10, %s1891_s21  ;;  %v1454_v16 = vpop.permute.xlu0 %1453  ;;  %v1487_v20 = vadd.f32 %v1452_v6, %v1966_v21 }
 0x32d   : > { %v1464_v0 = vsel %vm1457_vm11, %v1452_v6, %v1454_v16 }
 0x32e   : > { %v1488_v13 = vadd.f32 %v1464_v0, %v1954_v14 }
 0x32f   : > { %1514 = vrot.lane.b32.xlu0 %v1484_v8, %s1891_s21  ;;  %v1456_v2 = vpop.permute.xlu1 %1455 }
 0x330   : > { %1516 = vrot.lane.b32.xlu1 %v1485_v11, %s1891_s21  ;;  %v1465_v17 = vsel %vm1457_vm11, %v1454_v16, %v1456_v2 }
 0x331   : > { %v1489_v18 = vadd.f32 %v1465_v17, %v1962_v19 }
 0x333   : > { %1518 = vrot.lane.b32.xlu0 %v1486_v9, %s1891_s21 }
 0x334   : > { %1520 = vrot.lane.b32.xlu1 %v1487_v20, %s1891_s21 }
 0x337   : > { %1522 = vrot.lane.b32.xlu0 %v1488_v13, %s1891_s21 }
 0x338   : > { %1524 = vrot.lane.b32.xlu1 %v1489_v18, %s1891_s21 }
 0x395   : > { %v1503_v22 = vpop.permute.xlu0 %1502 }
 0x396   : > { %v1505_v14 = vpop.permute.xlu1 %1504 }
 0x397   : > { %v1527_v15 = vsel %vm689_vm5, %v1503_v22, %v1505_v14 }
 0x398   : > { %1547 = vst [vmem:[%s2212_s28] sm:$0xff] %v1527_v15 }
 0x399   : > { %v1507_v19 = vpop.permute.xlu0 %1506 }
 0x39a   : > { %v1528_v21 = vsel %vm689_vm5, %v1505_v14, %v1507_v19  ;;  %1550 = vst.msk [vmem:[%s2212_s28 + $0x10] sm:$0xff] %vm1549_vm12, %v1507_v19  ;;  %v1509_v23 = vpop.permute.xlu1 %1508 }
 0x39b   : > { %1548 = vst [vmem:[%s2212_s28 + $0x8] sm:$0xff] %v1528_v21 }
 0x39d   : > { %v1511_v24 = vpop.permute.xlu0 %1510 }
 0x39e   : > { %v1529_v25 = vsel %vm689_vm5, %v1509_v23, %v1511_v24  ;;  %v1513_v26 = vpop.permute.xlu1 %1512 }
 0x39f   : > { %1551 = vst [vmem:[%s2212_s28 + $0x18] sm:$0xff] %v1529_v25  ;;  %v1530_v27 = vsel %vm689_vm5, %v1511_v24, %v1513_v26  ;;  %1553 = vst.msk [vmem:[%s2212_s28 + $0x28] sm:$0xff] %vm1549_vm12, %v1513_v26 }
 0x3a0   : > { %1552 = vst [vmem:[%s2212_s28 + $0x20] sm:$0xff] %v1530_v27 }
 0x3a1   : > { %v1515_v28 = vpop.permute.xlu0 %1514 }
 0x3a2   : > { %v1517_v30 = vpop.permute.xlu1 %1516 }
 0x3a3   : > { %v1531_v31 = vsel %vm689_vm5, %v1515_v28, %v1517_v30 }
 0x3a4   : > { %1554 = vst [vmem:[%s2212_s28 + $0x30] sm:$0xff] %v1531_v31 }
 0x3a5   : > { %v1519_v32 = vpop.permute.xlu0 %1518 }
 0x3a6   : > { %v1532_v33 = vsel %vm689_vm5, %v1517_v30, %v1519_v32  ;;  %1556 = vst.msk [vmem:[%s2212_s28 + $0x40] sm:$0xff] %vm1549_vm12, %v1519_v32  ;;  %v1521_v34 = vpop.permute.xlu1 %1520 }
 0x3a7   : > { %1555 = vst [vmem:[%s2212_s28 + $0x38] sm:$0xff] %v1532_v33 }
 0x3a9   : > { %v1523_v35 = vpop.permute.xlu0 %1522 }
 0x3aa   : > { %v1533_v36 = vsel %vm689_vm5, %v1521_v34, %v1523_v35  ;;  %v1525_v37 = vpop.permute.xlu1 %1524 }
 0x3ab   : > { %1557 = vst [vmem:[%s2212_s28 + $0x48] sm:$0xff] %v1533_v36  ;;  %v1534_v38 = vsel %vm689_vm5, %v1523_v35, %v1525_v37  ;;  %1559 = vst.msk [vmem:[%s2212_s28 + $0x58] sm:$0xff] %vm1549_vm12, %v1525_v37 }
 0x3ac   : > { %1558 = vst [vmem:[%s2212_s28 + $0x50] sm:$0xff] %v1534_v38 }
 0x3ad PF: > { %s13_s12 = sadd.s32 1, %s1883_s12  }
 0x3ae   : > { %p10_p4 = scmp.ge.s32.totalorder %s13_s12, 4  }
 0x3b0   :  { %12 = sbr.rel (!%p10_p4) target bundleno = 1 (0x1), region = 70 }

</bundles_post_ra>
